<compile_context>
chip_gen: v5e
topology: v5e:2x2
jax: 0.10.0
libtpu: 0.0.40
codegen_flags: <defaults>
</compile_context>

<pallas_src>
import jax
import jax.numpy as jnp
import numpy as np
from jax.experimental import pallas as pl
from jax.experimental.pallas import tpu as pltpu

_LANES = 128
_MAX_TILE = 4096          # samples (lanes) per grid step


def _ls_ce_kernel(meta_ref, x_ref, out_ref):
    """Label-smoothing cross entropy for a class-major (C, TL) logits tile.

    meta_ref : VMEM f32[4, TL]  rows: lo, hi (inclusive target range; small
                                ints are exact in f32), smoothing, (1-sm)/K
    x_ref    : VMEM [C, TL]     logits, samples along lanes (cast to f32 here)
    out_ref  : VMEM f32[1, TL]  per-sample loss
    """
    x = x_ref[...].astype(jnp.float32)              # [C, TL]
    c = x.shape[0]                                  # static (block shape)

    lo = meta_ref[0:1, :]                           # [1, TL]
    hi = meta_ref[1:2, :]
    sm = meta_ref[2:3, :]
    conf_over_k = meta_ref[3:4, :]                  # (1 - smoothing) / |targets|

    # Numerically stable log_softmax over the class (sublane) axis,
    # unrolled over the static C rows -- cheap sublane ops, lane-dense.
    m = x[0:1, :]
    for i in range(1, c):
        m = jnp.maximum(m, x[i:i + 1, :])
    shifted = x - m                                 # [C, TL]
    e = jnp.exp(shifted)
    denom = e[0:1, :]
    for i in range(1, c):
        denom = denom + e[i:i + 1, :]
    lse = jnp.log(denom)                            # [1, TL]

    # total_lp = sum_i logprobs[i];  sel_lp = sum of logprobs over the
    # contiguous target range [lo, hi] (covers every branch of the module).
    total_lp = None
    sel_lp = None
    for i in range(c):
        lp_i = shifted[i:i + 1, :] - lse            # [1, TL]
        total_lp = lp_i if total_lp is None else total_lp + lp_i
        ci = float(i)                               # exact f32 compare (0..C-1)
        hit = jnp.where((ci >= lo) & (ci <= hi), lp_i, 0.0)
        sel_lp = hit if sel_lp is None else sel_lp + hit

    smooth_loss = total_lp * (-1.0 / c)             # -mean_i logprobs[i]
    # loss = (1-sm) * mean_{t in targets}(-logprob[t]) + sm * smooth_loss
    out_ref[...] = conf_over_k * (-sel_lp) + sm * smooth_loss


def _branch_meta(gt, dig, smoothing):
    """Host-side replica of the module's dig/target branch.

    Returns (lo, hi, smoothing): the target set is always the contiguous
    index range [lo, hi] (inclusive).
    """
    gt = int(gt)  # `gt` must already be a host int -> no device sync here.
    if (dig == 'wrinkle' and gt == 1) or (dig == 'pigmentation' and gt == 1):
        return 0, 2, 0.5
    if dig == 'sagging' and gt == 0:
        return 0, 1, 0.5
    if (dig == 'pore' and gt == 2) or (dig == 'dryness' and gt == 2):
        return 1, 3, 0.5
    return gt, gt, float(smoothing)


def _pick_tile(n):
    """Samples-per-step (multiple of 128) and padded sample count."""
    n_units = pl.cdiv(n, _LANES)
    max_units = _MAX_TILE // _LANES
    if n_units >= 2 * max_units:
        tile_units = max_units                 # big steps, overhead amortized
    else:
        tile_units = max(1, n_units // 2)      # >=2 steps when possible (v7x)
    tl = tile_units * _LANES
    n_pad = pl.cdiv(n, tl) * tl
    return tl, n_pad


def label_smoothing_cross_entropy_batch(x, targets, digs, smoothing):
    """Per-sample losses for a batch of (logits row, target, dig) triples.

    x        : [N, C] logits (float32 or bfloat16; cast to f32 in-kernel)
    targets  : length-N sequence of host ints (ground-truth classes)
    digs     : length-N sequence of python strings
    smoothing: python float (module's self.smoothing, used by default branch)
    returns  : float32[N] loss per sample (== module forward for each sample)
    """
    x = jnp.asarray(x)
    n, c = x.shape
    assert len(targets) == n and len(digs) == n

    tl, n_pad = _pick_tile(n)

    # Merged per-sample meta: lo, hi, smoothing, (1-smoothing)/count  (f32).
    meta = np.zeros((4, n_pad), np.float32)
    meta[3, :] = 1.0                       # harmless defaults for padded lanes
    for i, (t, d) in enumerate(zip(targets, digs)):
        lo_i, hi_i, sm_i = _branch_meta(t, d, smoothing)
        if not (0 <= lo_i <= hi_i < c):    # PyTorch's gather would raise here
            raise ValueError(f"target range [{lo_i},{hi_i}] out of bounds "
                             f"for {c} classes (row {i}, dig={d!r})")
        meta[0, i] = lo_i
        meta[1, i] = hi_i
        meta[2, i] = sm_i
        meta[3, i] = (1.0 - sm_i) / float(hi_i - lo_i + 1)

    # Class-major logits [C, n_pad]: samples along the 128-lane axis.
    xt = x.T
    if n_pad != n:
        xt = jnp.pad(xt, ((0, 0), (0, n_pad - n)))

    out = pl.pallas_call(
        _ls_ce_kernel,
        out_shape=jax.ShapeDtypeStruct((1, n_pad), jnp.float32),
        grid_spec=pltpu.PrefetchScalarGridSpec(
            num_scalar_prefetch=0,
            grid=(n_pad // tl,),
            in_specs=[
                pl.BlockSpec((4, tl), lambda i: (0, i)),   # meta
                pl.BlockSpec((c, tl), lambda i: (0, i)),   # logits (class-major)
            ],
            out_specs=pl.BlockSpec((1, tl), lambda i: (0, i)),
        ),
        compiler_params=pltpu.CompilerParams(
            dimension_semantics=("parallel",)),  # v7x: steps across both TCs
    )(jnp.asarray(meta), xt)

    return out[0, :n]


def label_smoothing_cross_entropy(x, target, dig, smoothing):
    """Single-sample API mirroring LabelSmoothingCrossEntropy.forward.

    x: [1, C] logits, target: host int, dig: str.  Prefer the batched entry
    point when scoring many samples (one kernel launch for all of them).
    """
    x = jnp.asarray(x).reshape(1, -1)
    return label_smoothing_cross_entropy_batch(
        x, [int(target)], [dig], smoothing)[0]


def _reference_row(x_row, target, dig, smoothing):
    """Pure-numpy replica of the PyTorch forward for one sample."""
    x = np.asarray(x_row, dtype=np.float64)[None, :]
    gt = int(target)
    if (dig == 'wrinkle' and gt == 1) or (dig == 'pigmentation' and gt == 1):
        tgt, sm = np.array([0, 1, 2]), 0.5
    elif dig == 'sagging' and gt == 0:
        tgt, sm = np.array([0, 1]), 0.5
    elif (dig == 'pore' and gt == 2) or (dig == 'dryness' and gt == 2):
        tgt, sm = np.array([1, 2, 3]), 0.5
    else:
        tgt, sm = np.array([gt]), float(smoothing)
    confidence = 1.0 - sm
    m = x.max(axis=-1, keepdims=True)
    logprobs = (x - m) - np.log(np.exp(x - m).sum(axis=-1, keepdims=True))
    nll = -logprobs[0, tgt]
    smooth = -logprobs.mean(axis=-1)[0]
    loss = confidence * nll + sm * smooth
    return float(loss.mean())


if __name__ == "__main__":
    key = jax.random.PRNGKey(0)
    C = 4                      # classes (module's targets range over 0..3)
    smoothing = 0.1
    cases = [                  # (dig, gt) covering every branch of the module
        ("pore", 2), ("wrinkle", 1), ("pigmentation", 1), ("sagging", 0),
        ("dryness", 2), ("other", 3), ("pore", 0), ("wrinkle", 2),
    ]
    N = len(cases)
    x = jax.random.normal(key, (N, C), dtype=jnp.float32)

    digs = [d for d, _ in cases]
    gts = [g for _, g in cases]

    # One kernel launch for the whole batch of samples.
    losses = jax.block_until_ready(
        label_smoothing_cross_entropy_batch(x, gts, digs, smoothing))

    x_np = np.asarray(x)
    ok = True
    for i, (d, g) in enumerate(cases):
        ref = _reference_row(x_np[i], g, d, smoothing)
        if not np.allclose(float(losses[i]), ref, rtol=1e-5, atol=1e-5):
            ok = False
            print(f"MISMATCH row={i} dig={d} gt={g}: "
                  f"kernel={float(losses[i])} ref={ref}")

    # Single-sample API (module-equivalent [1, C] call), exercising padding.
    single = jax.block_until_ready(
        label_smoothing_cross_entropy(x[2:3], gts[2], digs[2], smoothing))
    if not np.allclose(float(single),
                       _reference_row(x_np[2], gts[2], digs[2], smoothing),
                       rtol=1e-5, atol=1e-5):
        ok = False
        print("MISMATCH single-sample path")

    if ok:
        print("KERNEL_OK")
</pallas_src>

<mosaic_0001>
module attributes {stable_mosaic.version = 11 : i64} {
  func.func @_ls_ce_kernel(%arg0: i32, %arg1: memref<4x128xf32, #tpu.memory_space<vmem>>, %arg2: memref<4x128xf32, #tpu.memory_space<vmem>>, %arg3: memref<1x128xf32, #tpu.memory_space<vmem>>) attributes {dimension_semantics = [#tpu.dimension_semantics<parallel>], iteration_bounds = array<i64: 1>, scalar_prefetch = 0 : i64, scratch_operands = 0 : i64, tpu.core_type = #tpu.core_type<tc>, window_params = [{transform_indices = @transform_0, window_bounds = array<i64: 4, 128>}, {transform_indices = @transform_1, window_bounds = array<i64: 4, 128>}, {transform_indices = @transform_2, window_bounds = array<i64: 1, 128>}]} {
    %c0 = arith.constant 0 : index
    %c0_0 = arith.constant 0 : index
    %0 = vector.load %arg2[%c0, %c0_0] : memref<4x128xf32, #tpu.memory_space<vmem>>, vector<4x128xf32>
    %c0_1 = arith.constant 0 : index
    %c0_2 = arith.constant 0 : index
    %1 = vector.load %arg1[%c0_1, %c0_2] : memref<4x128xf32, #tpu.memory_space<vmem>>, vector<1x128xf32>
    %c1 = arith.constant 1 : index
    %c0_3 = arith.constant 0 : index
    %2 = vector.load %arg1[%c1, %c0_3] : memref<4x128xf32, #tpu.memory_space<vmem>>, vector<1x128xf32>
    %c2 = arith.constant 2 : index
    %c0_4 = arith.constant 0 : index
    %3 = vector.load %arg1[%c2, %c0_4] : memref<4x128xf32, #tpu.memory_space<vmem>>, vector<1x128xf32>
    %c3 = arith.constant 3 : index
    %c0_5 = arith.constant 0 : index
    %4 = vector.load %arg1[%c3, %c0_5] : memref<4x128xf32, #tpu.memory_space<vmem>>, vector<1x128xf32>
    %5 = vector.extract_strided_slice %0 {offsets = [0, 0], sizes = [1, 128], strides = [1, 1]} : vector<4x128xf32> to vector<1x128xf32>
    %6 = vector.extract_strided_slice %0 {offsets = [1, 0], sizes = [1, 128], strides = [1, 1]} : vector<4x128xf32> to vector<1x128xf32>
    %7 = arith.maximumf %5, %6 : vector<1x128xf32>
    %8 = vector.extract_strided_slice %0 {offsets = [2, 0], sizes = [1, 128], strides = [1, 1]} : vector<4x128xf32> to vector<1x128xf32>
    %9 = arith.maximumf %7, %8 : vector<1x128xf32>
    %10 = vector.extract_strided_slice %0 {offsets = [3, 0], sizes = [1, 128], strides = [1, 1]} : vector<4x128xf32> to vector<1x128xf32>
    %11 = arith.maximumf %9, %10 : vector<1x128xf32>
    %12 = vector.broadcast %11 : vector<1x128xf32> to vector<4x128xf32>
    %13 = arith.subf %0, %12 : vector<4x128xf32>
    %14 = math.exp %13 : vector<4x128xf32>
    %15 = vector.extract_strided_slice %14 {offsets = [0, 0], sizes = [1, 128], strides = [1, 1]} : vector<4x128xf32> to vector<1x128xf32>
    %16 = vector.extract_strided_slice %14 {offsets = [1, 0], sizes = [1, 128], strides = [1, 1]} : vector<4x128xf32> to vector<1x128xf32>
    %17 = arith.addf %15, %16 : vector<1x128xf32>
    %18 = vector.extract_strided_slice %14 {offsets = [2, 0], sizes = [1, 128], strides = [1, 1]} : vector<4x128xf32> to vector<1x128xf32>
    %19 = arith.addf %17, %18 : vector<1x128xf32>
    %20 = vector.extract_strided_slice %14 {offsets = [3, 0], sizes = [1, 128], strides = [1, 1]} : vector<4x128xf32> to vector<1x128xf32>
    %21 = arith.addf %19, %20 : vector<1x128xf32>
    %22 = math.log %21 : vector<1x128xf32>
    %23 = vector.extract_strided_slice %13 {offsets = [0, 0], sizes = [1, 128], strides = [1, 1]} : vector<4x128xf32> to vector<1x128xf32>
    %24 = arith.subf %23, %22 : vector<1x128xf32>
    %cst = arith.constant 0.000000e+00 : f32
    %25 = vector.broadcast %cst : f32 to vector<1x128xf32>
    %26 = arith.cmpf ole, %1, %25 : vector<1x128xf32>
    %cst_6 = arith.constant 0.000000e+00 : f32
    %27 = vector.broadcast %cst_6 : f32 to vector<1x128xf32>
    %28 = arith.cmpf oge, %2, %27 : vector<1x128xf32>
    %29 = arith.andi %26, %28 : vector<1x128xi1>
    %cst_7 = arith.constant 0.000000e+00 : f32
    %30 = vector.broadcast %cst_7 : f32 to vector<1x128xf32>
    %31 = arith.select %29, %24, %30 : vector<1x128xi1>, vector<1x128xf32>
    %32 = vector.extract_strided_slice %13 {offsets = [1, 0], sizes = [1, 128], strides = [1, 1]} : vector<4x128xf32> to vector<1x128xf32>
    %33 = arith.subf %32, %22 : vector<1x128xf32>
    %34 = arith.addf %24, %33 : vector<1x128xf32>
    %cst_8 = arith.constant 1.000000e+00 : f32
    %35 = vector.broadcast %cst_8 : f32 to vector<1x128xf32>
    %36 = arith.cmpf ole, %1, %35 : vector<1x128xf32>
    %cst_9 = arith.constant 1.000000e+00 : f32
    %37 = vector.broadcast %cst_9 : f32 to vector<1x128xf32>
    %38 = arith.cmpf oge, %2, %37 : vector<1x128xf32>
    %39 = arith.andi %36, %38 : vector<1x128xi1>
    %cst_10 = arith.constant 0.000000e+00 : f32
    %40 = vector.broadcast %cst_10 : f32 to vector<1x128xf32>
    %41 = arith.select %39, %33, %40 : vector<1x128xi1>, vector<1x128xf32>
    %42 = arith.addf %31, %41 : vector<1x128xf32>
    %43 = vector.extract_strided_slice %13 {offsets = [2, 0], sizes = [1, 128], strides = [1, 1]} : vector<4x128xf32> to vector<1x128xf32>
    %44 = arith.subf %43, %22 : vector<1x128xf32>
    %45 = arith.addf %34, %44 : vector<1x128xf32>
    %cst_11 = arith.constant 2.000000e+00 : f32
    %46 = vector.broadcast %cst_11 : f32 to vector<1x128xf32>
    %47 = arith.cmpf ole, %1, %46 : vector<1x128xf32>
    %cst_12 = arith.constant 2.000000e+00 : f32
    %48 = vector.broadcast %cst_12 : f32 to vector<1x128xf32>
    %49 = arith.cmpf oge, %2, %48 : vector<1x128xf32>
    %50 = arith.andi %47, %49 : vector<1x128xi1>
    %cst_13 = arith.constant 0.000000e+00 : f32
    %51 = vector.broadcast %cst_13 : f32 to vector<1x128xf32>
    %52 = arith.select %50, %44, %51 : vector<1x128xi1>, vector<1x128xf32>
    %53 = arith.addf %42, %52 : vector<1x128xf32>
    %54 = vector.extract_strided_slice %13 {offsets = [3, 0], sizes = [1, 128], strides = [1, 1]} : vector<4x128xf32> to vector<1x128xf32>
    %55 = arith.subf %54, %22 : vector<1x128xf32>
    %56 = arith.addf %45, %55 : vector<1x128xf32>
    %cst_14 = arith.constant 3.000000e+00 : f32
    %57 = vector.broadcast %cst_14 : f32 to vector<1x128xf32>
    %58 = arith.cmpf ole, %1, %57 : vector<1x128xf32>
    %cst_15 = arith.constant 3.000000e+00 : f32
    %59 = vector.broadcast %cst_15 : f32 to vector<1x128xf32>
    %60 = arith.cmpf oge, %2, %59 : vector<1x128xf32>
    %61 = arith.andi %58, %60 : vector<1x128xi1>
    %cst_16 = arith.constant 0.000000e+00 : f32
    %62 = vector.broadcast %cst_16 : f32 to vector<1x128xf32>
    %63 = arith.select %61, %55, %62 : vector<1x128xi1>, vector<1x128xf32>
    %64 = arith.addf %53, %63 : vector<1x128xf32>
    %cst_17 = arith.constant -2.500000e-01 : f32
    %65 = vector.broadcast %cst_17 : f32 to vector<1x128xf32>
    %66 = arith.mulf %56, %65 : vector<1x128xf32>
    %cst_18 = arith.constant 0.000000e+00 : f32
    %67 = vector.broadcast %cst_18 : f32 to vector<1x128xf32>
    %68 = arith.subf %67, %64 : vector<1x128xf32>
    %69 = arith.mulf %4, %68 : vector<1x128xf32>
    %70 = arith.mulf %3, %66 : vector<1x128xf32>
    %71 = arith.addf %69, %70 : vector<1x128xf32>
    %c0_19 = arith.constant 0 : index
    %c0_20 = arith.constant 0 : index
    %72 = vector.load %arg3[%c0_19, %c0_20] : memref<1x128xf32, #tpu.memory_space<vmem>>, vector<1x128xf32>
    tpu.vector_store %arg3[%c0_19, %c0_20], %71 {strides = array<i32>} : memref<1x128xf32, #tpu.memory_space<vmem>>, vector<1x128xf32>,
    return
  }
  func.func @transform_0(%arg0: i32) -> (i32, i32) {
    %c0_i32 = arith.constant 0 : i32
    %c0_i32_0 = arith.constant 0 : i32
    return %c0_i32, %arg0 : i32, i32
  }
  func.func @transform_1(%arg0: i32) -> (i32, i32) {
    %c0_i32 = arith.constant 0 : i32
    %c0_i32_0 = arith.constant 0 : i32
    return %c0_i32, %arg0 : i32, i32
  }
  func.func @transform_2(%arg0: i32) -> (i32, i32) {
    %c0_i32 = arith.constant 0 : i32
    %c0_i32_0 = arith.constant 0 : i32
    return %c0_i32, %arg0 : i32, i32
  }
}

</mosaic_0001>

<bundles_post_ra>
// kernel: tpu_custom_call.1
= control target key start
LH: loop header
LB: loop body
LE: loop exit
PB: predicated region body
PF: predicated region fallthrough
CT: control target
= control target key end

     0   :  { %7 = vsyncpa [#allocation3], 0  ;;  %s255_s0 = inlined_call_operand.hbm [shape: f32[4,128], index: 0, kind: input, shape index: {}]   ;;  %s256_s1 = inlined_call_operand.hbm [shape: f32[4,128], index: 1, kind: input, shape index: {}]   ;;  %s257_s2 = inlined_call_operand.hbm [shape: f32[1,128], index: 2, kind: output, shape index: {}]  }
   0x1   :  { %8 = vsyncpa [#allocation6], 0 }
   0x2   :  { %9 = vsyncpa [#allocation4], 0  ;;  %s15_s11 = sshll.u32 %s255_s0, 4  ;;  %s222_s12 = smov [#allocation2]   ;;  %s16_s11 = int_to_ptr.hbm [resolvable:$true] %s15_s11 }
   0x3   :  { %s17_s13 = sshll.u32 %s222_s12, 4  ;;  %s26_s16 = sshll.u32 %s256_s1, 4  ;;  %s18_s13 = int_to_ptr.vmem [resolvable:$true] %s17_s13  ;;  %s27_s16 = int_to_ptr.hbm [resolvable:$true] %s26_s16 }
   0x4   :  { %20 = dma.hbm_to_vmem [thread:$0]  %s16_s11, 64, %s18_s13, [#allocation3]  }
   0x5   :  { %s223_s17 = smov [#allocation5]  }
   0x6   :  { %s28_s18 = sshll.u32 %s223_s17, 4  ;;  %s29_s18 = int_to_ptr.vmem [resolvable:$true] %s28_s18 }
   0x7   :  { %31 = dma.hbm_to_vmem [thread:$0]  %s27_s16, 64, %s29_s18, [#allocation6]  }
   0x8   :  { %216 = dma.done.wait [#allocation3], 64  }
   0x9   :  { %217 = vsyncadd [#allocation3], 4294967232 }
   0xa   :  { %218 = dma.done.wait [#allocation6], 64  }
   0xb   :  { %219 = vsyncadd [#allocation6], 4294967232  ;;  %v40_v0 = vld [vmem:[#allocation5] sm:$0xf]  ;;  %v41_v17 = vld [vmem:[#allocation2] sm:$0x1] }
   0xc   :  { %v46_v1 = vrot.slane %v40_v0, 1  ;;  %v49_v2 = vrot.slane %v40_v0, 2  ;;  %v52_v4 = vrot.slane %v40_v0, 3  ;;  %v42_v18 = vld [vmem:[#allocation2 + $0x1] sm:$0x1]  ;;  %vm72_vm0 = vcmp.le.f32.partialorder %v41_v17, 0.0 }
   0xd   :  { %vm73_vm1 = vcmp.ge.f32.partialorder %v42_v18, 0.0  ;;  %vm84_vm2 = vcmp.le.f32.partialorder %v41_v17, 1.0  ;;  %vm85_vm3 = vcmp.ge.f32.partialorder %v42_v18, 1.0  ;;  %vm96_vm4 = vcmp.le.f32.partialorder %v41_v17, 2.0  ;;  %v43_v41 = vld [vmem:[#allocation2 + $0x2] sm:$0x1] }
   0xe   :  { %v48_v3 = vmax.f32 %v40_v0, %v46_v1  ;;  %vm97_vm5 = vcmp.ge.f32.partialorder %v42_v18, 2.0  ;;  %vm246_vm6 = vmand %vm72_vm0, %vm73_vm1  ;;  %vm108_vm7 = vcmp.le.f32.partialorder %v41_v17, 3.0  ;;  %vm109_vm9 = vcmp.ge.f32.partialorder %v42_v18, 3.0  ;;  %v44_v43 = vld [vmem:[#allocation2 + $0x3] sm:$0x1]  ;;  %s224_s0 = smov [#allocation7]  }
   0xf   :  { %vm86_vm8 = vmand %vm84_vm2, %vm85_vm3  ;;  %s124_s1 = sshll.u32 %s224_s0, 4  ;;  %s126_s21 = sshll.u32 %s257_s2, 4  ;;  %s125_s1 = int_to_ptr.vmem [resolvable:$true] %s124_s1  ;;  %s127_s21 = int_to_ptr.hbm [resolvable:$true] %s126_s21 }
  0x10   :  { %v51_v5 = vmax.f32 %v48_v3, %v49_v2  ;;  %vm98_vm10 = vmand %vm96_vm4, %vm97_vm5 }
  0x11   :  { %vm110_vm11 = vmand %vm108_vm7, %vm109_vm9 }
  0x12   :  { %v54_v6 = vmax.f32 %v51_v5, %v52_v4 }
  0x14   :  { %v55_v7 = vperm.slane %v54_v6, 0 }
  0x16   :  { %v56_v8 = vsub.f32 %v40_v0, %v55_v7 }
  0x18   :  { %v57_v9 = vmul.f32 1.442695, %v56_v8 }
  0x1a   :  { %140 = vpow2.f32 %v57_v9 }
  0x20   :  { %v141_v10 = vpop.eup %140 }
  0x21   :  { %v60_v11 = vrot.slane %v141_v10, 1  ;;  %v63_v12 = vrot.slane %v141_v10, 2  ;;  %v66_v14 = vrot.slane %v141_v10, 3 }
  0x23   :  { %v62_v13 = vadd.f32 %v141_v10, %v60_v11 }
  0x25   :  { %v65_v15 = vadd.f32 %v63_v12, %v62_v13 }
  0x27   :  { %v68_v16 = vadd.f32 %v66_v14, %v65_v15 }
  0x29   :  { %142 = vlog2.f32 %v68_v16 }
  0x2f   :  { %v143_v19 = vpop.eup %142 }
  0x30   :  { %v70_v20 = vmul.f32 0.6931472, %v143_v19 }
  0x32   :  { %v71_v21 = vsub.f32 %v56_v8, %v70_v20  ;;  %v77_v22 = vrot.slane %v70_v20, 7  ;;  %v89_v23 = vrot.slane %v70_v20, 6  ;;  %v101_v24 = vrot.slane %v70_v20, 5 }
  0x34   :  { %v79_v26 = vsub.f32 %v56_v8, %v77_v22  ;;  %v91_v27 = vsub.f32 %v56_v8, %v89_v23  ;;  %v103_v28 = vsub.f32 %v56_v8, %v101_v24  ;;  %v75_v29 = vsel %vm246_vm6, %v71_v21, 0.0 }
  0x36   :  { %v81_v30 = vrot.slane %v79_v26, 1  ;;  %v93_v31 = vrot.slane %v91_v27, 2  ;;  %v105_v32 = vrot.slane %v103_v28, 3 }
  0x38   :  { %v83_v33 = vadd.f32 %v81_v30, %v71_v21  ;;  %v87_v34 = vsel %vm86_vm8, %v81_v30, 0.0  ;;  %v99_v35 = vsel %vm98_vm10, %v93_v31, 0.0  ;;  %v111_v38 = vsel %vm110_vm11, %v105_v32, 0.0 }
  0x39   :  { %v88_v36 = vadd.f32 %v87_v34, %v75_v29 }
  0x3a   :  { %v95_v37 = vadd.f32 %v93_v31, %v83_v33 }
  0x3b   :  { %v100_v39 = vadd.f32 %v99_v35, %v88_v36 }
  0x3c   :  { %v107_v40 = vadd.f32 %v105_v32, %v95_v37 }
  0x3d   :  { %v112_v42 = vadd.f32 %v111_v38, %v100_v39 }
  0x3e   :  { %v113_v44 = vmul.f32 -0.25, %v107_v40 }
  0x3f   :  { %v114_v45 = vsub.f32 0.0, %v112_v42 }
  0x40   :  { %v116_v46 = vmul.f32 %v113_v44, %v43_v41 }
  0x41   :  { %v115_v47 = vmul.f32 %v114_v45, %v44_v43 }
  0x43   :  { %v117_v48 = vadd.f32 %v116_v46, %v115_v47 }
  0x45   :  { %118 = vst [vmem:[#allocation7] sm:$0x1] %v117_v48 }
  0x46   :  { %129 = dma.vmem_to_hbm [thread:$0]  %s125_s1, 16, %s127_s21, [#allocation4]  }
  0x47   :  { %220 = dma.done.wait [#allocation4], 16  }
  0x48   :  { %221 = vsyncadd [#allocation4], 4294967280 }
  0x49   :  { %134 = vsyncpa [#allocation3], 1 }
  0x4a   :  { %135 = vsyncpa [#allocation6], 1 }
  0x4b   :  { %136 = vsyncpa [#allocation4], 1 }

</bundles_post_ra>
